<compile_context>
chip_gen: v7x
topology: tpu7x:2x2x1
jax: 0.10.0
libtpu: 0.0.40
codegen_flags: <defaults>
</compile_context>

<pallas_src>
import functools

import jax
import jax.numpy as jnp
import numpy as np
from jax.experimental import pallas as pl
from jax.experimental.pallas import tpu as pltpu


# ----------------------------------------------------------------------------
# Pallas kernel: one batch element per grid step, everything resident in VMEM.
# ----------------------------------------------------------------------------
def _seres2net_kernel(
    x_ref,            # (1, Cin, Tp)   bf16  (zero-padded beyond t_true)
    ce_w_ref,         # (Cout, Cin)    bf16  conv_expand weight (1x1 conv)
    ce_b_ref,         # (Cout, 1)      f32   conv_expand bias
    conv_w_ref,       # (S-1, W, K*W)  bf16  fused branch conv weights
    bn_scale_ref,     # (S-1, W, 1)    f32   folded branch BN scale
    bn_shift_ref,     # (S-1, W, 1)    f32   folded branch BN shift (+conv bias)
    se1_w_ref,        # (Cse, Cout)    f32
    se1_b_ref,        # (Cse, 1)       f32
    se2_w_ref,        # (Cout, Cse)    f32
    se2_b_ref,        # (Cout, 1)      f32
    bnf_scale_ref,    # (Cout, 1)      f32   folded final BN scale
    bnf_shift_ref,    # (Cout, 1)      f32
    out_ref,          # (1, Cout, Tp)  x.dtype
    res_scratch,      # (S, W, Tp)     bf16  VMEM slab: residual chunks
    y_scratch,        # (S-1, W, Tp)   bf16  VMEM slab: branch outputs 1..S-1
    *,
    scale: int,
    width: int,
    ksize: int,
    dilation: int,
    t_true: int,
):
    f32, bf16 = jnp.float32, jnp.bfloat16
    Tp = x_ref.shape[-1]
    has_pad = Tp != t_true
    pad = (ksize - 1) * dilation // 2

    # residual = conv_expand(x): 1x1 conv == bf16 matmul over channels, f32 acc.
    x = x_ref[0]                                               # (Cin, Tp) bf16
    res = (jnp.dot(ce_w_ref[...], x, preferred_element_type=f32)
           + ce_b_ref[...])                                    # (Cout, Tp) f32
    for i in range(scale):
        res_scratch[i] = res[i * width:(i + 1) * width, :].astype(bf16)

    # Hoisted per-tap boundary masks.  Only taps with a nonzero offset can read
    # out of range; padded lanes (t >= t_true) may hold garbage values but the
    # masks (checked against t_true) keep them out of every valid column.
    t_idx = jax.lax.broadcasted_iota(jnp.int32, (1, Tp), 1)
    offsets = [j * dilation - pad for j in range(ksize)]
    masks = [None if off == 0 else ((t_idx + off >= 0) & (t_idx + off < t_true))
             for off in offsets]
    time_valid = (t_idx < t_true) if has_pad else None

    def pooled_sum(v):                         # SE pooling sum over valid time
        if has_pad:
            v = jnp.where(time_valid, v, 0.0)
        return jnp.sum(v, axis=-1, keepdims=True)

    # Res2Net branches: sequential conv/BN/ReLU.  Each finished branch goes to
    # the bf16 VMEM slab; only the previous branch stays live as an f32 value.
    pooled_parts = []
    y_prev = None
    for i in range(scale):
        xi = res_scratch[i].astype(f32)                        # (W, Tp) f32
        if i == 0:
            y = xi                 # branch 0 == residual chunk 0 (slab reused)
        else:
            inp = xi + y_prev                                  # (W, Tp) f32
            # Dilated conv as ONE deep-contraction matmul: stack the K shifted
            # (boundary-masked) copies of inp along the contraction axis, then
            # (W, K*W) @ (K*W, Tp) on the MXU (bf16 x bf16 -> f32 acc).
            taps = []
            for off, m in zip(offsets, masks):
                if off == 0:
                    taps.append(inp)                           # no mask needed
                else:
                    s = pltpu.roll(inp, shift=(-off) % Tp, axis=1)
                    taps.append(jnp.where(m, s, 0.0))
            stacked = jnp.concatenate(taps, axis=0).astype(bf16)   # (K*W, Tp)
            y = jnp.dot(conv_w_ref[i - 1], stacked,
                        preferred_element_type=f32)                # (W, Tp)
            # BN (eval, folded; conv bias folded into shift) + ReLU.
            y = jnp.maximum(y * bn_scale_ref[i - 1] + bn_shift_ref[i - 1], 0.0)
            y_scratch[i - 1] = y.astype(bf16)
        pooled_parts.append(pooled_sum(y))
        y_prev = y

    # Squeeze-Excitation: global avg pool over true T, two 1x1 convs, sigmoid.
    pooled = jnp.concatenate(pooled_parts, axis=0) * (1.0 / t_true)  # (Cout,1)
    h = jnp.maximum(
        jnp.dot(se1_w_ref[...], pooled, preferred_element_type=f32)
        + se1_b_ref[...], 0.0)                                       # (Cse, 1)
    # Fold the final (eval) BatchNorm scale into the SE gate: a per-channel
    # multiply instead of an extra full (Cout, Tp) pass in the epilogue.
    gate = jax.nn.sigmoid(
        jnp.dot(se2_w_ref[...], h, preferred_element_type=f32)
        + se2_b_ref[...]) * bnf_scale_ref[...]                       # (Cout,1)
    bnf_shift = bnf_shift_ref[...]                                   # (Cout,1)

    # Epilogue: SE gate, folded final BN, ReLU, dropout(identity), + residual.
    out_parts = []
    for i in range(scale):
        y_i = (res_scratch[0] if i == 0 else y_scratch[i - 1]).astype(f32)
        o = jnp.maximum(y_i * gate[i * width:(i + 1) * width]
                        + bnf_shift[i * width:(i + 1) * width], 0.0)
        res_i = y_i if i == 0 else res_scratch[i].astype(f32)
        out_parts.append(o + res_i)
    out_ref[0] = jnp.concatenate(out_parts, axis=0).astype(out_ref.dtype)


# ----------------------------------------------------------------------------
# Wrapper
# ----------------------------------------------------------------------------
_PARAM_ORDER = (
    "ce_w", "ce_b", "conv_w", "bn_scale", "bn_shift",
    "se1_w", "se1_b", "se2_w", "se2_b", "bnf_scale", "bnf_shift",
)


def _const_spec(arr):
    nd = arr.ndim
    return pl.BlockSpec(arr.shape, lambda b, _nd=nd: (0,) * _nd)


def _prepare_kernel_params(p, *, res2net_scale, kernel_size):
    """Host-side param prep: fuse conv taps, fold conv bias into BN shift,
    cast heavy matmul weights to bf16."""
    S, K = res2net_scale, kernel_size
    width = p["conv_w"].shape[2]
    # (S-1, K, W, W) [branch, tap, out, in] -> (S-1, W, K*W) with
    # fused[o, j*W + c] == conv_w[j, o, c]
    conv_w_fused = jnp.transpose(p["conv_w"], (0, 2, 1, 3)).reshape(
        S - 1, width, K * width)
    shift_fused = p["bn_scale"] * p["conv_b"] + p["bn_shift"]
    f32 = jnp.float32
    bf = jnp.bfloat16
    return {
        "ce_w": p["ce_w"].astype(bf),
        "ce_b": p["ce_b"].astype(f32),
        "conv_w": conv_w_fused.astype(bf),
        "bn_scale": p["bn_scale"].astype(f32),
        "bn_shift": shift_fused.astype(f32),
        "se1_w": p["se1_w"].astype(f32),
        "se1_b": p["se1_b"].astype(f32),
        "se2_w": p["se2_w"].astype(f32),
        "se2_b": p["se2_b"].astype(f32),
        "bnf_scale": p["bnf_scale"].astype(f32),
        "bnf_shift": p["bnf_shift"].astype(f32),
    }


def seres2net_forward(x, params, *, res2net_scale, kernel_size, dilation):
    B, Cin, T = x.shape
    Cout = params["ce_w"].shape[0]
    assert res2net_scale >= 2, "res2net_scale must be >= 2"
    assert Cout % res2net_scale == 0, "out_channels must divide res2net_scale"
    width = Cout // res2net_scale
    T_pad = ((T + 127) // 128) * 128          # lane-dense loads/stores

    kp = _prepare_kernel_params(params, res2net_scale=res2net_scale,
                                kernel_size=kernel_size)
    plist = [kp[k] for k in _PARAM_ORDER]

    # bf16 input halves HBM traffic / doubles MXU throughput; cast BEFORE
    # padding so the pad writes half the bytes (and is skipped when T%128==0).
    x_bf = x.astype(jnp.bfloat16)
    x_pad = x_bf if T_pad == T else jnp.pad(
        x_bf, ((0, 0), (0, 0), (0, T_pad - T)))

    kernel = functools.partial(
        _seres2net_kernel,
        scale=res2net_scale,
        width=width,
        ksize=kernel_size,
        dilation=dilation,
        t_true=T,
    )

    in_specs = [pl.BlockSpec((1, Cin, T_pad), lambda b: (b, 0, 0))]
    in_specs += [_const_spec(p) for p in plist]

    # Honest VMEM budget: derived from actual block/slab sizes, capped at 90%
    # of the physical per-core VMEM reported by the hardware (64 MiB on v7x).
    param_bytes = sum(int(p.size) * p.dtype.itemsize for p in plist)
    out_itemsize = jnp.dtype(x.dtype).itemsize
    slab_rows = max(width, 16)                # bf16 sublane packing of slabs
    need = (2 * Cin * T_pad * 2               # x block, bf16, double-buffered
            + 2 * Cout * T_pad * out_itemsize  # out block, double-buffered
            + (2 * res2net_scale - 1) * slab_rows * T_pad * 2  # bf16 slabs
            + 2 * param_bytes                  # param blocks, double-buffered
            + 4 * Cout * T_pad * 4)            # f32 in-kernel temporaries
    try:
        vmem_cap = int(pltpu.get_tpu_info().vmem_capacity_bytes)
    except Exception:                          # conservative fallback
        vmem_cap = 64 * 2 ** 20
    vmem_limit = int(min(int(0.9 * vmem_cap), max(32 * 2 ** 20, 2 * need)))

    out = pl.pallas_call(
        kernel,
        out_shape=jax.ShapeDtypeStruct((B, Cout, T_pad), x.dtype),
        grid=(B,),
        in_specs=in_specs,
        out_specs=pl.BlockSpec((1, Cout, T_pad), lambda b: (b, 0, 0)),
        scratch_shapes=[
            pltpu.VMEM((res2net_scale, width, T_pad), jnp.bfloat16),      # res
            pltpu.VMEM((res2net_scale - 1, width, T_pad), jnp.bfloat16),  # y
        ],
        compiler_params=pltpu.CompilerParams(
            dimension_semantics=("parallel",),        # shard B across TCs (v7x)
            vmem_limit_bytes=vmem_limit,
        ),
    )(x_pad, *plist)
    return out if T_pad == T else out[:, :, :T]


# ----------------------------------------------------------------------------
# Pure-JAX reference (independent conv via lax.conv_general_dilated).
# Mirrors the kernel's bf16 quantization of the heavy matmul operands so the
# comparison isolates implementation error rather than bf16 rounding.
# ----------------------------------------------------------------------------
def reference_forward(x, p, *, res2net_scale, kernel_size, dilation):
    Cout = p["ce_w"].shape[0]
    width = Cout // res2net_scale
    pad = (kernel_size - 1) * dilation // 2
    bf = jnp.bfloat16

    residual = jnp.einsum(
        "oi,bit->bot", p["ce_w"].astype(bf), x.astype(bf),
        preferred_element_type=jnp.float32) + p["ce_b"][None]

    def dconv(xc, w_kio, b):
        # w_kio: (K, O, I) -> (O, I, K)
        w_oik = jnp.transpose(w_kio, (1, 2, 0)).astype(bf)
        y = jax.lax.conv_general_dilated(
            xc.astype(bf), w_oik, window_strides=(1,), padding=[(pad, pad)],
            rhs_dilation=(dilation,), dimension_numbers=("NCH", "OIH", "NCH"),
            preferred_element_type=jnp.float32)
        return y + b[None]

    ys = []
    for i in range(res2net_scale):
        xi = residual[:, i * width:(i + 1) * width, :]
        if i == 0:
            ys.append(xi)
        else:
            inp = xi + ys[-1]
            y = dconv(inp, p["conv_w"][i - 1], p["conv_b"][i - 1])
            y = y * p["bn_scale"][i - 1][None] + p["bn_shift"][i - 1][None]
            ys.append(jnp.maximum(y, 0.0))
    out = jnp.concatenate(ys, axis=1)

    pooled = out.mean(axis=-1, keepdims=True)
    h = jnp.maximum(jnp.einsum("so,bot->bst", p["se1_w"], pooled)
                    + p["se1_b"][None], 0.0)
    sw = jax.nn.sigmoid(jnp.einsum("os,bst->bot", p["se2_w"], h)
                        + p["se2_b"][None])
    out = out * sw
    out = out * p["bnf_scale"][None] + p["bnf_shift"][None]
    out = jnp.maximum(out, 0.0)
    return out + residual


# ----------------------------------------------------------------------------
# Deterministic parameter init + smoke test
# ----------------------------------------------------------------------------
def make_params(key, Cin, Cout, Cse, S, K):
    width = Cout // S
    ks = jax.random.split(key, 16)
    f32 = jnp.float32
    eps = 1e-5

    def bn_fold(kg, kb, km, kv, shape):
        gamma = 1.0 + 0.1 * jax.random.normal(kg, shape, f32)
        beta = 0.1 * jax.random.normal(kb, shape, f32)
        mean = 0.1 * jax.random.normal(km, shape, f32)
        var = jnp.abs(jax.random.normal(kv, shape, f32)) + 0.5
        scale = gamma / jnp.sqrt(var + eps)
        shift = beta - mean * scale
        return scale, shift

    bn_scale, bn_shift = bn_fold(ks[4], ks[5], ks[6], ks[7], (S - 1, width, 1))
    bnf_scale, bnf_shift = bn_fold(ks[8], ks[9], ks[10], ks[11], (Cout, 1))

    return {
        "ce_w": 0.1 * jax.random.normal(ks[0], (Cout, Cin), f32),
        "ce_b": 0.1 * jax.random.normal(ks[1], (Cout, 1), f32),
        # (S-1, K, W, W): [branch, tap, out_ch, in_ch]
        "conv_w": 0.1 * jax.random.normal(ks[2], (S - 1, K, width, width), f32),
        "conv_b": 0.1 * jax.random.normal(ks[3], (S - 1, width, 1), f32),
        "bn_scale": bn_scale,
        "bn_shift": bn_shift,
        "se1_w": 0.1 * jax.random.normal(ks[12], (Cse, Cout), f32),
        "se1_b": 0.1 * jax.random.normal(ks[13], (Cse, 1), f32),
        "se2_w": 0.1 * jax.random.normal(ks[14], (Cout, Cse), f32),
        "se2_b": 0.1 * jax.random.normal(ks[15], (Cout, 1), f32),
        "bnf_scale": bnf_scale,
        "bnf_shift": bnf_shift,
    }


if __name__ == "__main__":
    # Module hyper-params (small, consistent with SERes2NetBlock.__init__)
    B, Cin, Cout = 2, 16, 32
    kernel_size, dilation = 3, 2
    res2net_scale, se_channels = 4, 8

    root = jax.random.PRNGKey(0)
    kx, kp = jax.random.split(root)
    params = make_params(kp, Cin, Cout, se_channels, res2net_scale, kernel_size)

    # Exercise both compile-time paths: T not a multiple of 128 (padded time,
    # masked SE pooling + wrapper slice) and T a multiple of 128 (lane-dense,
    # no masking / no slice).
    for T in (32, 128):
        x = jax.random.normal(jax.random.fold_in(kx, T), (B, Cin, T),
                              jnp.float32)
        out = seres2net_forward(
            x, params,
            res2net_scale=res2net_scale,
            kernel_size=kernel_size,
            dilation=dilation,
        )
        out = jax.block_until_ready(out)

        ref = jax.block_until_ready(reference_forward(
            x, params,
            res2net_scale=res2net_scale,
            kernel_size=kernel_size,
            dilation=dilation,
        ))

        assert out.shape == (B, Cout, T), out.shape
        # bf16 matmul operands + bf16 VMEM slabs (deliberate perf choices) ->
        # compare with bf16-level tolerance; both paths use the same heavy-op
        # quantization so this mostly covers accumulation-order / slab-rounding
        # differences.
        np.testing.assert_allclose(np.asarray(out), np.asarray(ref),
                                   rtol=2e-2, atol=2e-2)
    print("KERNEL_OK")
</pallas_src>

<mosaic_0001>
module attributes {stable_mosaic.version = 11 : i64} {
  func.func @_seres2net_kernel(%arg0: i32, %arg1: memref<1x16x128xbf16, #tpu.memory_space<vmem>>, %arg2: memref<32x16xbf16, #tpu.memory_space<vmem>>, %arg3: memref<32x1xf32, #tpu.memory_space<vmem>>, %arg4: memref<3x8x24xbf16, #tpu.memory_space<vmem>>, %arg5: memref<3x8x1xf32, #tpu.memory_space<vmem>>, %arg6: memref<3x8x1xf32, #tpu.memory_space<vmem>>, %arg7: memref<8x32xf32, #tpu.memory_space<vmem>>, %arg8: memref<8x1xf32, #tpu.memory_space<vmem>>, %arg9: memref<32x8xf32, #tpu.memory_space<vmem>>, %arg10: memref<32x1xf32, #tpu.memory_space<vmem>>, %arg11: memref<32x1xf32, #tpu.memory_space<vmem>>, %arg12: memref<32x1xf32, #tpu.memory_space<vmem>>, %arg13: memref<1x32x128xf32, #tpu.memory_space<vmem>>, %arg14: memref<4x8x128xbf16, #tpu.memory_space<vmem>>, %arg15: memref<3x8x128xbf16, #tpu.memory_space<vmem>>) attributes {dimension_semantics = [#tpu.dimension_semantics<parallel>], iteration_bounds = array<i64: 2>, scalar_prefetch = 0 : i64, scratch_operands = 2 : i64, tpu.core_type = #tpu.core_type<tc>, window_params = [{transform_indices = @transform_0, window_bounds = array<i64: 1, 16, 128>}, {pipeline_mode = #tpu.pipeline_mode<synchronous>, transform_indices = @transform_1, window_bounds = array<i64: 32, 16>}, {pipeline_mode = #tpu.pipeline_mode<synchronous>, transform_indices = @transform_2, window_bounds = array<i64: 32, 1>}, {pipeline_mode = #tpu.pipeline_mode<synchronous>, transform_indices = @transform_3, window_bounds = array<i64: 3, 8, 24>}, {pipeline_mode = #tpu.pipeline_mode<synchronous>, transform_indices = @transform_4, window_bounds = array<i64: 3, 8, 1>}, {pipeline_mode = #tpu.pipeline_mode<synchronous>, transform_indices = @transform_5, window_bounds = array<i64: 3, 8, 1>}, {pipeline_mode = #tpu.pipeline_mode<synchronous>, transform_indices = @transform_6, window_bounds = array<i64: 8, 32>}, {pipeline_mode = #tpu.pipeline_mode<synchronous>, transform_indices = @transform_7, window_bounds = array<i64: 8, 1>}, {pipeline_mode = #tpu.pipeline_mode<synchronous>, transform_indices = @transform_8, window_bounds = array<i64: 32, 8>}, {pipeline_mode = #tpu.pipeline_mode<synchronous>, transform_indices = @transform_9, window_bounds = array<i64: 32, 1>}, {pipeline_mode = #tpu.pipeline_mode<synchronous>, transform_indices = @transform_10, window_bounds = array<i64: 32, 1>}, {pipeline_mode = #tpu.pipeline_mode<synchronous>, transform_indices = @transform_11, window_bounds = array<i64: 32, 1>}, {transform_indices = @transform_12, window_bounds = array<i64: 1, 32, 128>}]} {
    %c0 = arith.constant 0 : index
    %c0_0 = arith.constant 0 : index
    %c0_1 = arith.constant 0 : index
    %0 = vector.load %arg1[%c0, %c0_0, %c0_1] : memref<1x16x128xbf16, #tpu.memory_space<vmem>>, vector<1x16x128xbf16>
    %1 = vector.shape_cast %0 : vector<1x16x128xbf16> to vector<16x128xbf16>
    %c0_2 = arith.constant 0 : index
    %c0_3 = arith.constant 0 : index
    %2 = vector.load %arg2[%c0_2, %c0_3] : memref<32x16xbf16, #tpu.memory_space<vmem>>, vector<32x16xbf16>
    %cst = arith.constant dense<0.000000e+00> : vector<32x128xf32>
    %3 = tpu.matmul %2, %1, %cst {dimension_numbers = #tpu.dot_dimension_numbers<[1], [0], [0], [1], [0, 0, 1, 1], [], []>} : vector<32x16xbf16>, vector<16x128xbf16>, vector<32x128xf32> -> vector<32x128xf32>
    %c0_4 = arith.constant 0 : index
    %c0_5 = arith.constant 0 : index
    %4 = vector.load %arg3[%c0_4, %c0_5] : memref<32x1xf32, #tpu.memory_space<vmem>>, vector<32x1xf32>
    %5 = vector.broadcast %4 : vector<32x1xf32> to vector<32x128xf32>
    %6 = arith.addf %3, %5 : vector<32x128xf32>
    %7 = vector.extract_strided_slice %6 {offsets = [0, 0], sizes = [8, 128], strides = [1, 1]} : vector<32x128xf32> to vector<8x128xf32>
    %8 = arith.truncf %7 : vector<8x128xf32> to vector<8x128xbf16>
    %c0_6 = arith.constant 0 : index
    %c0_7 = arith.constant 0 : index
    %c0_8 = arith.constant 0 : index
    %9 = vector.load %arg14[%c0_6, %c0_7, %c0_8] : memref<4x8x128xbf16, #tpu.memory_space<vmem>>, vector<1x8x128xbf16>
    %10 = vector.shape_cast %9 : vector<1x8x128xbf16> to vector<8x128xbf16>
    %11 = vector.shape_cast %8 : vector<8x128xbf16> to vector<1x8x128xbf16>
    tpu.vector_store %arg14[%c0_6, %c0_7, %c0_8], %11 {strides = array<i32>} : memref<4x8x128xbf16, #tpu.memory_space<vmem>>, vector<1x8x128xbf16>,
    %12 = vector.extract_strided_slice %6 {offsets = [8, 0], sizes = [8, 128], strides = [1, 1]} : vector<32x128xf32> to vector<8x128xf32>
    %13 = arith.truncf %12 : vector<8x128xf32> to vector<8x128xbf16>
    %c1 = arith.constant 1 : index
    %c0_9 = arith.constant 0 : index
    %c0_10 = arith.constant 0 : index
    %14 = vector.load %arg14[%c1, %c0_9, %c0_10] : memref<4x8x128xbf16, #tpu.memory_space<vmem>>, vector<1x8x128xbf16>
    %15 = vector.shape_cast %14 : vector<1x8x128xbf16> to vector<8x128xbf16>
    %16 = vector.shape_cast %13 : vector<8x128xbf16> to vector<1x8x128xbf16>
    tpu.vector_store %arg14[%c1, %c0_9, %c0_10], %16 {strides = array<i32>} : memref<4x8x128xbf16, #tpu.memory_space<vmem>>, vector<1x8x128xbf16>,
    %17 = vector.extract_strided_slice %6 {offsets = [16, 0], sizes = [8, 128], strides = [1, 1]} : vector<32x128xf32> to vector<8x128xf32>
    %18 = arith.truncf %17 : vector<8x128xf32> to vector<8x128xbf16>
    %c2 = arith.constant 2 : index
    %c0_11 = arith.constant 0 : index
    %c0_12 = arith.constant 0 : index
    %19 = vector.load %arg14[%c2, %c0_11, %c0_12] : memref<4x8x128xbf16, #tpu.memory_space<vmem>>, vector<1x8x128xbf16>
    %20 = vector.shape_cast %19 : vector<1x8x128xbf16> to vector<8x128xbf16>
    %21 = vector.shape_cast %18 : vector<8x128xbf16> to vector<1x8x128xbf16>
    tpu.vector_store %arg14[%c2, %c0_11, %c0_12], %21 {strides = array<i32>} : memref<4x8x128xbf16, #tpu.memory_space<vmem>>, vector<1x8x128xbf16>,
    %22 = vector.extract_strided_slice %6 {offsets = [24, 0], sizes = [8, 128], strides = [1, 1]} : vector<32x128xf32> to vector<8x128xf32>
    %23 = arith.truncf %22 : vector<8x128xf32> to vector<8x128xbf16>
    %c3 = arith.constant 3 : index
    %c0_13 = arith.constant 0 : index
    %c0_14 = arith.constant 0 : index
    %24 = vector.load %arg14[%c3, %c0_13, %c0_14] : memref<4x8x128xbf16, #tpu.memory_space<vmem>>, vector<1x8x128xbf16>
    %25 = vector.shape_cast %24 : vector<1x8x128xbf16> to vector<8x128xbf16>
    %26 = vector.shape_cast %23 : vector<8x128xbf16> to vector<1x8x128xbf16>
    tpu.vector_store %arg14[%c3, %c0_13, %c0_14], %26 {strides = array<i32>} : memref<4x8x128xbf16, #tpu.memory_space<vmem>>, vector<1x8x128xbf16>,
    %27 = tpu.iota {dimensions = array<i32: 1>} : vector<1x128xi32>
    %c-2_i32 = arith.constant -2 : i32
    %28 = vector.broadcast %c-2_i32 : i32 to vector<1x128xi32>
    %29 = arith.addi %27, %28 : vector<1x128xi32>
    %c0_i32 = arith.constant 0 : i32
    %30 = vector.broadcast %c0_i32 : i32 to vector<1x128xi32>
    %31 = arith.cmpi sge, %29, %30 : vector<1x128xi32>
    %c-2_i32_15 = arith.constant -2 : i32
    %32 = vector.broadcast %c-2_i32_15 : i32 to vector<1x128xi32>
    %33 = arith.addi %27, %32 : vector<1x128xi32>
    %c32_i32 = arith.constant 32 : i32
    %34 = vector.broadcast %c32_i32 : i32 to vector<1x128xi32>
    %35 = arith.cmpi slt, %33, %34 : vector<1x128xi32>
    %36 = arith.andi %31, %35 : vector<1x128xi1>
    %c2_i32 = arith.constant 2 : i32
    %37 = vector.broadcast %c2_i32 : i32 to vector<1x128xi32>
    %38 = arith.addi %27, %37 : vector<1x128xi32>
    %c0_i32_16 = arith.constant 0 : i32
    %39 = vector.broadcast %c0_i32_16 : i32 to vector<1x128xi32>
    %40 = arith.cmpi sge, %38, %39 : vector<1x128xi32>
    %c2_i32_17 = arith.constant 2 : i32
    %41 = vector.broadcast %c2_i32_17 : i32 to vector<1x128xi32>
    %42 = arith.addi %27, %41 : vector<1x128xi32>
    %c32_i32_18 = arith.constant 32 : i32
    %43 = vector.broadcast %c32_i32_18 : i32 to vector<1x128xi32>
    %44 = arith.cmpi slt, %42, %43 : vector<1x128xi32>
    %45 = arith.andi %40, %44 : vector<1x128xi1>
    %c32_i32_19 = arith.constant 32 : i32
    %46 = vector.broadcast %c32_i32_19 : i32 to vector<1x128xi32>
    %47 = arith.cmpi slt, %27, %46 : vector<1x128xi32>
    %c0_20 = arith.constant 0 : index
    %c0_21 = arith.constant 0 : index
    %c0_22 = arith.constant 0 : index
    %48 = vector.load %arg14[%c0_20, %c0_21, %c0_22] : memref<4x8x128xbf16, #tpu.memory_space<vmem>>, vector<1x8x128xbf16>
    %49 = vector.shape_cast %48 : vector<1x8x128xbf16> to vector<8x128xbf16>
    %50 = arith.extf %49 : vector<8x128xbf16> to vector<8x128xf32>
    %cst_23 = arith.constant 0.000000e+00 : f32
    %51 = vector.shape_cast %47 : vector<1x128xi1> to vector<1x128xi1>
    %52 = vector.broadcast %51 : vector<1x128xi1> to vector<8x128xi1>
    %53 = vector.broadcast %cst_23 : f32 to vector<8x128xf32>
    %54 = arith.select %52, %50, %53 : vector<8x128xi1>, vector<8x128xf32>
    %cst_24 = arith.constant dense<0.000000e+00> : vector<8xf32>
    %55 = vector.multi_reduction <add>, %54, %cst_24 [1] : vector<8x128xf32> to vector<8xf32>
    %56 = vector.shape_cast %55 : vector<8xf32> to vector<8x1xf32>
    %c1_25 = arith.constant 1 : index
    %c0_26 = arith.constant 0 : index
    %c0_27 = arith.constant 0 : index
    %57 = vector.load %arg14[%c1_25, %c0_26, %c0_27] : memref<4x8x128xbf16, #tpu.memory_space<vmem>>, vector<1x8x128xbf16>
    %58 = vector.shape_cast %57 : vector<1x8x128xbf16> to vector<8x128xbf16>
    %59 = arith.extf %58 : vector<8x128xbf16> to vector<8x128xf32>
    %60 = arith.addf %59, %50 : vector<8x128xf32>
    %c2_i32_28 = arith.constant 2 : i32
    %61 = tpu.dynamic_rotate %60 by %c2_i32_28 dim 1 : vector<8x128xf32>, i32 -> vector<8x128xf32>
    %cst_29 = arith.constant 0.000000e+00 : f32
    %62 = vector.shape_cast %36 : vector<1x128xi1> to vector<1x128xi1>
    %63 = vector.broadcast %62 : vector<1x128xi1> to vector<8x128xi1>
    %64 = vector.broadcast %cst_29 : f32 to vector<8x128xf32>
    %65 = arith.select %63, %61, %64 : vector<8x128xi1>, vector<8x128xf32>
    %c126_i32 = arith.constant 126 : i32
    %66 = tpu.dynamic_rotate %60 by %c126_i32 dim 1 : vector<8x128xf32>, i32 -> vector<8x128xf32>
    %cst_30 = arith.constant 0.000000e+00 : f32
    %67 = vector.shape_cast %45 : vector<1x128xi1> to vector<1x128xi1>
    %68 = vector.broadcast %67 : vector<1x128xi1> to vector<8x128xi1>
    %69 = vector.broadcast %cst_30 : f32 to vector<8x128xf32>
    %70 = arith.select %68, %66, %69 : vector<8x128xi1>, vector<8x128xf32>
    %71 = tpu.concatenate %65, %60, %70 in 0 : vector<8x128xf32>, vector<8x128xf32>, vector<8x128xf32> -> vector<24x128xf32>
    %72 = arith.truncf %71 : vector<24x128xf32> to vector<24x128xbf16>
    %c0_31 = arith.constant 0 : index
    %c0_32 = arith.constant 0 : index
    %c0_33 = arith.constant 0 : index
    %73 = vector.load %arg4[%c0_31, %c0_32, %c0_33] : memref<3x8x24xbf16, #tpu.memory_space<vmem>>, vector<1x8x24xbf16>
    %74 = vector.shape_cast %73 : vector<1x8x24xbf16> to vector<8x24xbf16>
    %cst_34 = arith.constant dense<0.000000e+00> : vector<8x128xf32>
    %75 = tpu.matmul %74, %72, %cst_34 {dimension_numbers = #tpu.dot_dimension_numbers<[1], [0], [0], [1], [0, 0, 1, 1], [], []>} : vector<8x24xbf16>, vector<24x128xbf16>, vector<8x128xf32> -> vector<8x128xf32>
    %c0_35 = arith.constant 0 : index
    %c0_36 = arith.constant 0 : index
    %c0_37 = arith.constant 0 : index
    %76 = vector.load %arg5[%c0_35, %c0_36, %c0_37] : memref<3x8x1xf32, #tpu.memory_space<vmem>>, vector<1x8x1xf32>
    %77 = vector.shape_cast %76 : vector<1x8x1xf32> to vector<8x1xf32>
    %78 = vector.broadcast %77 : vector<8x1xf32> to vector<8x128xf32>
    %79 = arith.mulf %75, %78 : vector<8x128xf32>
    %c0_38 = arith.constant 0 : index
    %c0_39 = arith.constant 0 : index
    %c0_40 = arith.constant 0 : index
    %80 = vector.load %arg6[%c0_38, %c0_39, %c0_40] : memref<3x8x1xf32, #tpu.memory_space<vmem>>, vector<1x8x1xf32>
    %81 = vector.shape_cast %80 : vector<1x8x1xf32> to vector<8x1xf32>
    %82 = vector.broadcast %81 : vector<8x1xf32> to vector<8x128xf32>
    %83 = arith.addf %79, %82 : vector<8x128xf32>
    %cst_41 = arith.constant 0.000000e+00 : f32
    %84 = vector.broadcast %cst_41 : f32 to vector<8x128xf32>
    %85 = arith.maximumf %83, %84 : vector<8x128xf32>
    %86 = arith.truncf %85 : vector<8x128xf32> to vector<8x128xbf16>
    %c0_42 = arith.constant 0 : index
    %c0_43 = arith.constant 0 : index
    %c0_44 = arith.constant 0 : index
    %87 = vector.load %arg15[%c0_42, %c0_43, %c0_44] : memref<3x8x128xbf16, #tpu.memory_space<vmem>>, vector<1x8x128xbf16>
    %88 = vector.shape_cast %87 : vector<1x8x128xbf16> to vector<8x128xbf16>
    %89 = vector.shape_cast %86 : vector<8x128xbf16> to vector<1x8x128xbf16>
    tpu.vector_store %arg15[%c0_42, %c0_43, %c0_44], %89 {strides = array<i32>} : memref<3x8x128xbf16, #tpu.memory_space<vmem>>, vector<1x8x128xbf16>,
    %cst_45 = arith.constant 0.000000e+00 : f32
    %90 = vector.shape_cast %47 : vector<1x128xi1> to vector<1x128xi1>
    %91 = vector.broadcast %90 : vector<1x128xi1> to vector<8x128xi1>
    %92 = vector.broadcast %cst_45 : f32 to vector<8x128xf32>
    %93 = arith.select %91, %85, %92 : vector<8x128xi1>, vector<8x128xf32>
    %cst_46 = arith.constant dense<0.000000e+00> : vector<8xf32>
    %94 = vector.multi_reduction <add>, %93, %cst_46 [1] : vector<8x128xf32> to vector<8xf32>
    %95 = vector.shape_cast %94 : vector<8xf32> to vector<8x1xf32>
    %c2_47 = arith.constant 2 : index
    %c0_48 = arith.constant 0 : index
    %c0_49 = arith.constant 0 : index
    %96 = vector.load %arg14[%c2_47, %c0_48, %c0_49] : memref<4x8x128xbf16, #tpu.memory_space<vmem>>, vector<1x8x128xbf16>
    %97 = vector.shape_cast %96 : vector<1x8x128xbf16> to vector<8x128xbf16>
    %98 = arith.extf %97 : vector<8x128xbf16> to vector<8x128xf32>
    %99 = arith.addf %98, %85 : vector<8x128xf32>
    %c2_i32_50 = arith.constant 2 : i32
    %100 = tpu.dynamic_rotate %99 by %c2_i32_50 dim 1 : vector<8x128xf32>, i32 -> vector<8x128xf32>
    %cst_51 = arith.constant 0.000000e+00 : f32
    %101 = vector.shape_cast %36 : vector<1x128xi1> to vector<1x128xi1>
    %102 = vector.broadcast %101 : vector<1x128xi1> to vector<8x128xi1>
    %103 = vector.broadcast %cst_51 : f32 to vector<8x128xf32>
    %104 = arith.select %102, %100, %103 : vector<8x128xi1>, vector<8x128xf32>
    %c126_i32_52 = arith.constant 126 : i32
    %105 = tpu.dynamic_rotate %99 by %c126_i32_52 dim 1 : vector<8x128xf32>, i32 -> vector<8x128xf32>
    %cst_53 = arith.constant 0.000000e+00 : f32
    %106 = vector.shape_cast %45 : vector<1x128xi1> to vector<1x128xi1>
    %107 = vector.broadcast %106 : vector<1x128xi1> to vector<8x128xi1>
    %108 = vector.broadcast %cst_53 : f32 to vector<8x128xf32>
    %109 = arith.select %107, %105, %108 : vector<8x128xi1>, vector<8x128xf32>
    %110 = tpu.concatenate %104, %99, %109 in 0 : vector<8x128xf32>, vector<8x128xf32>, vector<8x128xf32> -> vector<24x128xf32>
    %111 = arith.truncf %110 : vector<24x128xf32> to vector<24x128xbf16>
    %c1_54 = arith.constant 1 : index
    %c0_55 = arith.constant 0 : index
    %c0_56 = arith.constant 0 : index
    %112 = vector.load %arg4[%c1_54, %c0_55, %c0_56] : memref<3x8x24xbf16, #tpu.memory_space<vmem>>, vector<1x8x24xbf16>
    %113 = vector.shape_cast %112 : vector<1x8x24xbf16> to vector<8x24xbf16>
    %cst_57 = arith.constant dense<0.000000e+00> : vector<8x128xf32>
    %114 = tpu.matmul %113, %111, %cst_57 {dimension_numbers = #tpu.dot_dimension_numbers<[1], [0], [0], [1], [0, 0, 1, 1], [], []>} : vector<8x24xbf16>, vector<24x128xbf16>, vector<8x128xf32> -> vector<8x128xf32>
    %c1_58 = arith.constant 1 : index
    %c0_59 = arith.constant 0 : index
    %c0_60 = arith.constant 0 : index
    %115 = vector.load %arg5[%c1_58, %c0_59, %c0_60] : memref<3x8x1xf32, #tpu.memory_space<vmem>>, vector<1x8x1xf32>
    %116 = vector.shape_cast %115 : vector<1x8x1xf32> to vector<8x1xf32>
    %117 = vector.broadcast %116 : vector<8x1xf32> to vector<8x128xf32>
    %118 = arith.mulf %114, %117 : vector<8x128xf32>
    %c1_61 = arith.constant 1 : index
    %c0_62 = arith.constant 0 : index
    %c0_63 = arith.constant 0 : index
    %119 = vector.load %arg6[%c1_61, %c0_62, %c0_63] : memref<3x8x1xf32, #tpu.memory_space<vmem>>, vector<1x8x1xf32>
    %120 = vector.shape_cast %119 : vector<1x8x1xf32> to vector<8x1xf32>
    %121 = vector.broadcast %120 : vector<8x1xf32> to vector<8x128xf32>
    %122 = arith.addf %118, %121 : vector<8x128xf32>
    %cst_64 = arith.constant 0.000000e+00 : f32
    %123 = vector.broadcast %cst_64 : f32 to vector<8x128xf32>
    %124 = arith.maximumf %122, %123 : vector<8x128xf32>
    %125 = arith.truncf %124 : vector<8x128xf32> to vector<8x128xbf16>
    %c1_65 = arith.constant 1 : index
    %c0_66 = arith.constant 0 : index
    %c0_67 = arith.constant 0 : index
    %126 = vector.load %arg15[%c1_65, %c0_66, %c0_67] : memref<3x8x128xbf16, #tpu.memory_space<vmem>>, vector<1x8x128xbf16>
    %127 = vector.shape_cast %126 : vector<1x8x128xbf16> to vector<8x128xbf16>
    %128 = vector.shape_cast %125 : vector<8x128xbf16> to vector<1x8x128xbf16>
    tpu.vector_store %arg15[%c1_65, %c0_66, %c0_67], %128 {strides = array<i32>} : memref<3x8x128xbf16, #tpu.memory_space<vmem>>, vector<1x8x128xbf16>,
    %cst_68 = arith.constant 0.000000e+00 : f32
    %129 = vector.shape_cast %47 : vector<1x128xi1> to vector<1x128xi1>
    %130 = vector.broadcast %129 : vector<1x128xi1> to vector<8x128xi1>
    %131 = vector.broadcast %cst_68 : f32 to vector<8x128xf32>
    %132 = arith.select %130, %124, %131 : vector<8x128xi1>, vector<8x128xf32>
    %cst_69 = arith.constant dense<0.000000e+00> : vector<8xf32>
    %133 = vector.multi_reduction <add>, %132, %cst_69 [1] : vector<8x128xf32> to vector<8xf32>
    %134 = vector.shape_cast %133 : vector<8xf32> to vector<8x1xf32>
    %c3_70 = arith.constant 3 : index
    %c0_71 = arith.constant 0 : index
    %c0_72 = arith.constant 0 : index
    %135 = vector.load %arg14[%c3_70, %c0_71, %c0_72] : memref<4x8x128xbf16, #tpu.memory_space<vmem>>, vector<1x8x128xbf16>
    %136 = vector.shape_cast %135 : vector<1x8x128xbf16> to vector<8x128xbf16>
    %137 = arith.extf %136 : vector<8x128xbf16> to vector<8x128xf32>
    %138 = arith.addf %137, %124 : vector<8x128xf32>
    %c2_i32_73 = arith.constant 2 : i32
    %139 = tpu.dynamic_rotate %138 by %c2_i32_73 dim 1 : vector<8x128xf32>, i32 -> vector<8x128xf32>
    %cst_74 = arith.constant 0.000000e+00 : f32
    %140 = vector.shape_cast %36 : vector<1x128xi1> to vector<1x128xi1>
    %141 = vector.broadcast %140 : vector<1x128xi1> to vector<8x128xi1>
    %142 = vector.broadcast %cst_74 : f32 to vector<8x128xf32>
    %143 = arith.select %141, %139, %142 : vector<8x128xi1>, vector<8x128xf32>
    %c126_i32_75 = arith.constant 126 : i32
    %144 = tpu.dynamic_rotate %138 by %c126_i32_75 dim 1 : vector<8x128xf32>, i32 -> vector<8x128xf32>
    %cst_76 = arith.constant 0.000000e+00 : f32
    %145 = vector.shape_cast %45 : vector<1x128xi1> to vector<1x128xi1>
    %146 = vector.broadcast %145 : vector<1x128xi1> to vector<8x128xi1>
    %147 = vector.broadcast %cst_76 : f32 to vector<8x128xf32>
    %148 = arith.select %146, %144, %147 : vector<8x128xi1>, vector<8x128xf32>
    %149 = tpu.concatenate %143, %138, %148 in 0 : vector<8x128xf32>, vector<8x128xf32>, vector<8x128xf32> -> vector<24x128xf32>
    %150 = arith.truncf %149 : vector<24x128xf32> to vector<24x128xbf16>
    %c2_77 = arith.constant 2 : index
    %c0_78 = arith.constant 0 : index
    %c0_79 = arith.constant 0 : index
    %151 = vector.load %arg4[%c2_77, %c0_78, %c0_79] : memref<3x8x24xbf16, #tpu.memory_space<vmem>>, vector<1x8x24xbf16>
    %152 = vector.shape_cast %151 : vector<1x8x24xbf16> to vector<8x24xbf16>
    %cst_80 = arith.constant dense<0.000000e+00> : vector<8x128xf32>
    %153 = tpu.matmul %152, %150, %cst_80 {dimension_numbers = #tpu.dot_dimension_numbers<[1], [0], [0], [1], [0, 0, 1, 1], [], []>} : vector<8x24xbf16>, vector<24x128xbf16>, vector<8x128xf32> -> vector<8x128xf32>
    %c2_81 = arith.constant 2 : index
    %c0_82 = arith.constant 0 : index
    %c0_83 = arith.constant 0 : index
    %154 = vector.load %arg5[%c2_81, %c0_82, %c0_83] : memref<3x8x1xf32, #tpu.memory_space<vmem>>, vector<1x8x1xf32>
    %155 = vector.shape_cast %154 : vector<1x8x1xf32> to vector<8x1xf32>
    %156 = vector.broadcast %155 : vector<8x1xf32> to vector<8x128xf32>
    %157 = arith.mulf %153, %156 : vector<8x128xf32>
    %c2_84 = arith.constant 2 : index
    %c0_85 = arith.constant 0 : index
    %c0_86 = arith.constant 0 : index
    %158 = vector.load %arg6[%c2_84, %c0_85, %c0_86] : memref<3x8x1xf32, #tpu.memory_space<vmem>>, vector<1x8x1xf32>
    %159 = vector.shape_cast %158 : vector<1x8x1xf32> to vector<8x1xf32>
    %160 = vector.broadcast %159 : vector<8x1xf32> to vector<8x128xf32>
    %161 = arith.addf %157, %160 : vector<8x128xf32>
    %cst_87 = arith.constant 0.000000e+00 : f32
    %162 = vector.broadcast %cst_87 : f32 to vector<8x128xf32>
    %163 = arith.maximumf %161, %162 : vector<8x128xf32>
    %164 = arith.truncf %163 : vector<8x128xf32> to vector<8x128xbf16>
    %c2_88 = arith.constant 2 : index
    %c0_89 = arith.constant 0 : index
    %c0_90 = arith.constant 0 : index
    %165 = vector.load %arg15[%c2_88, %c0_89, %c0_90] : memref<3x8x128xbf16, #tpu.memory_space<vmem>>, vector<1x8x128xbf16>
    %166 = vector.shape_cast %165 : vector<1x8x128xbf16> to vector<8x128xbf16>
    %167 = vector.shape_cast %164 : vector<8x128xbf16> to vector<1x8x128xbf16>
    tpu.vector_store %arg15[%c2_88, %c0_89, %c0_90], %167 {strides = array<i32>} : memref<3x8x128xbf16, #tpu.memory_space<vmem>>, vector<1x8x128xbf16>,
    %cst_91 = arith.constant 0.000000e+00 : f32
    %168 = vector.shape_cast %47 : vector<1x128xi1> to vector<1x128xi1>
    %169 = vector.broadcast %168 : vector<1x128xi1> to vector<8x128xi1>
    %170 = vector.broadcast %cst_91 : f32 to vector<8x128xf32>
    %171 = arith.select %169, %163, %170 : vector<8x128xi1>, vector<8x128xf32>
    %cst_92 = arith.constant dense<0.000000e+00> : vector<8xf32>
    %172 = vector.multi_reduction <add>, %171, %cst_92 [1] : vector<8x128xf32> to vector<8xf32>
    %173 = vector.shape_cast %172 : vector<8xf32> to vector<8x1xf32>
    %174 = tpu.concatenate %56, %95, %134, %173 in 0 : vector<8x1xf32>, vector<8x1xf32>, vector<8x1xf32>, vector<8x1xf32> -> vector<32x1xf32>
    %cst_93 = arith.constant 3.125000e-02 : f32
    %175 = vector.broadcast %cst_93 : f32 to vector<32x1xf32>
    %176 = arith.mulf %174, %175 : vector<32x1xf32>
    %c0_94 = arith.constant 0 : index
    %c0_95 = arith.constant 0 : index
    %177 = vector.load %arg7[%c0_94, %c0_95] : memref<8x32xf32, #tpu.memory_space<vmem>>, vector<8x32xf32>
    %cst_96 = arith.constant dense<0.000000e+00> : vector<8x1xf32>
    %178 = tpu.matmul %177, %176, %cst_96 {dimension_numbers = #tpu.dot_dimension_numbers<[1], [0], [0], [1], [0, 0, 1, 1], [], []>} : vector<8x32xf32>, vector<32x1xf32>, vector<8x1xf32> -> vector<8x1xf32>
    %c0_97 = arith.constant 0 : index
    %c0_98 = arith.constant 0 : index
    %179 = vector.load %arg8[%c0_97, %c0_98] : memref<8x1xf32, #tpu.memory_space<vmem>>, vector<8x1xf32>
    %180 = arith.addf %178, %179 : vector<8x1xf32>
    %cst_99 = arith.constant 0.000000e+00 : f32
    %181 = vector.broadcast %cst_99 : f32 to vector<8x1xf32>
    %182 = arith.maximumf %180, %181 : vector<8x1xf32>
    %c0_100 = arith.constant 0 : index
    %c0_101 = arith.constant 0 : index
    %183 = vector.load %arg9[%c0_100, %c0_101] : memref<32x8xf32, #tpu.memory_space<vmem>>, vector<32x8xf32>
    %cst_102 = arith.constant dense<0.000000e+00> : vector<32x1xf32>
    %184 = tpu.matmul %183, %182, %cst_102 {dimension_numbers = #tpu.dot_dimension_numbers<[1], [0], [0], [1], [0, 0, 1, 1], [], []>} : vector<32x8xf32>, vector<8x1xf32>, vector<32x1xf32> -> vector<32x1xf32>
    %c0_103 = arith.constant 0 : index
    %c0_104 = arith.constant 0 : index
    %185 = vector.load %arg10[%c0_103, %c0_104] : memref<32x1xf32, #tpu.memory_space<vmem>>, vector<32x1xf32>
    %186 = arith.addf %184, %185 : vector<32x1xf32>
    %187 = arith.negf %186 : vector<32x1xf32>
    %188 = math.exp %187 : vector<32x1xf32>
    %cst_105 = arith.constant 1.000000e+00 : f32
    %189 = vector.broadcast %cst_105 : f32 to vector<32x1xf32>
    %190 = arith.addf %189, %188 : vector<32x1xf32>
    %191 = arith.divf %189, %190 : vector<32x1xf32>
    %c0_106 = arith.constant 0 : index
    %c0_107 = arith.constant 0 : index
    %192 = vector.load %arg11[%c0_106, %c0_107] : memref<32x1xf32, #tpu.memory_space<vmem>>, vector<32x1xf32>
    %193 = arith.mulf %191, %192 : vector<32x1xf32>
    %c0_108 = arith.constant 0 : index
    %c0_109 = arith.constant 0 : index
    %194 = vector.load %arg12[%c0_108, %c0_109] : memref<32x1xf32, #tpu.memory_space<vmem>>, vector<32x1xf32>
    %c0_110 = arith.constant 0 : index
    %c0_111 = arith.constant 0 : index
    %c0_112 = arith.constant 0 : index
    %195 = vector.load %arg14[%c0_110, %c0_111, %c0_112] : memref<4x8x128xbf16, #tpu.memory_space<vmem>>, vector<1x8x128xbf16>
    %196 = vector.shape_cast %195 : vector<1x8x128xbf16> to vector<8x128xbf16>
    %197 = arith.extf %196 : vector<8x128xbf16> to vector<8x128xf32>
    %198 = vector.extract_strided_slice %193 {offsets = [0, 0], sizes = [8, 1], strides = [1, 1]} : vector<32x1xf32> to vector<8x1xf32>
    %199 = vector.broadcast %198 : vector<8x1xf32> to vector<8x128xf32>
    %200 = arith.mulf %197, %199 : vector<8x128xf32>
    %201 = vector.extract_strided_slice %194 {offsets = [0, 0], sizes = [8, 1], strides = [1, 1]} : vector<32x1xf32> to vector<8x1xf32>
    %202 = vector.broadcast %201 : vector<8x1xf32> to vector<8x128xf32>
    %203 = arith.addf %200, %202 : vector<8x128xf32>
    %cst_113 = arith.constant 0.000000e+00 : f32
    %204 = vector.broadcast %cst_113 : f32 to vector<8x128xf32>
    %205 = arith.maximumf %203, %204 : vector<8x128xf32>
    %206 = arith.addf %205, %197 : vector<8x128xf32>
    %c0_114 = arith.constant 0 : index
    %c0_115 = arith.constant 0 : index
    %c0_116 = arith.constant 0 : index
    %207 = vector.load %arg15[%c0_114, %c0_115, %c0_116] : memref<3x8x128xbf16, #tpu.memory_space<vmem>>, vector<1x8x128xbf16>
    %208 = vector.shape_cast %207 : vector<1x8x128xbf16> to vector<8x128xbf16>
    %209 = arith.extf %208 : vector<8x128xbf16> to vector<8x128xf32>
    %210 = vector.extract_strided_slice %193 {offsets = [8, 0], sizes = [8, 1], strides = [1, 1]} : vector<32x1xf32> to vector<8x1xf32>
    %211 = vector.broadcast %210 : vector<8x1xf32> to vector<8x128xf32>
    %212 = arith.mulf %209, %211 : vector<8x128xf32>
    %213 = vector.extract_strided_slice %194 {offsets = [8, 0], sizes = [8, 1], strides = [1, 1]} : vector<32x1xf32> to vector<8x1xf32>
    %214 = vector.broadcast %213 : vector<8x1xf32> to vector<8x128xf32>
    %215 = arith.addf %212, %214 : vector<8x128xf32>
    %cst_117 = arith.constant 0.000000e+00 : f32
    %216 = vector.broadcast %cst_117 : f32 to vector<8x128xf32>
    %217 = arith.maximumf %215, %216 : vector<8x128xf32>
    %c1_118 = arith.constant 1 : index
    %c0_119 = arith.constant 0 : index
    %c0_120 = arith.constant 0 : index
    %218 = vector.load %arg14[%c1_118, %c0_119, %c0_120] : memref<4x8x128xbf16, #tpu.memory_space<vmem>>, vector<1x8x128xbf16>
    %219 = vector.shape_cast %218 : vector<1x8x128xbf16> to vector<8x128xbf16>
    %220 = arith.extf %219 : vector<8x128xbf16> to vector<8x128xf32>
    %221 = arith.addf %217, %220 : vector<8x128xf32>
    %c1_121 = arith.constant 1 : index
    %c0_122 = arith.constant 0 : index
    %c0_123 = arith.constant 0 : index
    %222 = vector.load %arg15[%c1_121, %c0_122, %c0_123] : memref<3x8x128xbf16, #tpu.memory_space<vmem>>, vector<1x8x128xbf16>
    %223 = vector.shape_cast %222 : vector<1x8x128xbf16> to vector<8x128xbf16>
    %224 = arith.extf %223 : vector<8x128xbf16> to vector<8x128xf32>
    %225 = vector.extract_strided_slice %193 {offsets = [16, 0], sizes = [8, 1], strides = [1, 1]} : vector<32x1xf32> to vector<8x1xf32>
    %226 = vector.broadcast %225 : vector<8x1xf32> to vector<8x128xf32>
    %227 = arith.mulf %224, %226 : vector<8x128xf32>
    %228 = vector.extract_strided_slice %194 {offsets = [16, 0], sizes = [8, 1], strides = [1, 1]} : vector<32x1xf32> to vector<8x1xf32>
    %229 = vector.broadcast %228 : vector<8x1xf32> to vector<8x128xf32>
    %230 = arith.addf %227, %229 : vector<8x128xf32>
    %cst_124 = arith.constant 0.000000e+00 : f32
    %231 = vector.broadcast %cst_124 : f32 to vector<8x128xf32>
    %232 = arith.maximumf %230, %231 : vector<8x128xf32>
    %c2_125 = arith.constant 2 : index
    %c0_126 = arith.constant 0 : index
    %c0_127 = arith.constant 0 : index
    %233 = vector.load %arg14[%c2_125, %c0_126, %c0_127] : memref<4x8x128xbf16, #tpu.memory_space<vmem>>, vector<1x8x128xbf16>
    %234 = vector.shape_cast %233 : vector<1x8x128xbf16> to vector<8x128xbf16>
    %235 = arith.extf %234 : vector<8x128xbf16> to vector<8x128xf32>
    %236 = arith.addf %232, %235 : vector<8x128xf32>
    %c2_128 = arith.constant 2 : index
    %c0_129 = arith.constant 0 : index
    %c0_130 = arith.constant 0 : index
    %237 = vector.load %arg15[%c2_128, %c0_129, %c0_130] : memref<3x8x128xbf16, #tpu.memory_space<vmem>>, vector<1x8x128xbf16>
    %238 = vector.shape_cast %237 : vector<1x8x128xbf16> to vector<8x128xbf16>
    %239 = arith.extf %238 : vector<8x128xbf16> to vector<8x128xf32>
    %240 = vector.extract_strided_slice %193 {offsets = [24, 0], sizes = [8, 1], strides = [1, 1]} : vector<32x1xf32> to vector<8x1xf32>
    %241 = vector.broadcast %240 : vector<8x1xf32> to vector<8x128xf32>
    %242 = arith.mulf %239, %241 : vector<8x128xf32>
    %243 = vector.extract_strided_slice %194 {offsets = [24, 0], sizes = [8, 1], strides = [1, 1]} : vector<32x1xf32> to vector<8x1xf32>
    %244 = vector.broadcast %243 : vector<8x1xf32> to vector<8x128xf32>
    %245 = arith.addf %242, %244 : vector<8x128xf32>
    %cst_131 = arith.constant 0.000000e+00 : f32
    %246 = vector.broadcast %cst_131 : f32 to vector<8x128xf32>
    %247 = arith.maximumf %245, %246 : vector<8x128xf32>
    %c3_132 = arith.constant 3 : index
    %c0_133 = arith.constant 0 : index
    %c0_134 = arith.constant 0 : index
    %248 = vector.load %arg14[%c3_132, %c0_133, %c0_134] : memref<4x8x128xbf16, #tpu.memory_space<vmem>>, vector<1x8x128xbf16>
    %249 = vector.shape_cast %248 : vector<1x8x128xbf16> to vector<8x128xbf16>
    %250 = arith.extf %249 : vector<8x128xbf16> to vector<8x128xf32>
    %251 = arith.addf %247, %250 : vector<8x128xf32>
    %252 = tpu.concatenate %206, %221, %236, %251 in 0 : vector<8x128xf32>, vector<8x128xf32>, vector<8x128xf32>, vector<8x128xf32> -> vector<32x128xf32>
    %c0_135 = arith.constant 0 : index
    %c0_136 = arith.constant 0 : index
    %c0_137 = arith.constant 0 : index
    %253 = vector.load %arg13[%c0_135, %c0_136, %c0_137] : memref<1x32x128xf32, #tpu.memory_space<vmem>>, vector<1x32x128xf32>
    %254 = vector.shape_cast %253 : vector<1x32x128xf32> to vector<32x128xf32>
    %255 = vector.shape_cast %252 : vector<32x128xf32> to vector<1x32x128xf32>
    tpu.vector_store %arg13[%c0_135, %c0_136, %c0_137], %255 {strides = array<i32>} : memref<1x32x128xf32, #tpu.memory_space<vmem>>, vector<1x32x128xf32>,
    return
  }
  func.func @transform_0(%arg0: i32) -> (i32, i32, i32) {
    %c0_i32 = arith.constant 0 : i32
    %c0_i32_0 = arith.constant 0 : i32
    %c0_i32_1 = arith.constant 0 : i32
    return %arg0, %c0_i32, %c0_i32_0 : i32, i32, i32
  }
  func.func @transform_1(%arg0: i32) -> (i32, i32) {
    %c0_i32 = arith.constant 0 : i32
    %c0_i32_0 = arith.constant 0 : i32
    %c0_i32_1 = arith.constant 0 : i32
    return %c0_i32, %c0_i32_0 : i32, i32
  }
  func.func @transform_2(%arg0: i32) -> (i32, i32) {
    %c0_i32 = arith.constant 0 : i32
    %c0_i32_0 = arith.constant 0 : i32
    %c0_i32_1 = arith.constant 0 : i32
    return %c0_i32, %c0_i32_0 : i32, i32
  }
  func.func @transform_3(%arg0: i32) -> (i32, i32, i32) {
    %c0_i32 = arith.constant 0 : i32
    %c0_i32_0 = arith.constant 0 : i32
    %c0_i32_1 = arith.constant 0 : i32
    %c0_i32_2 = arith.constant 0 : i32
    return %c0_i32, %c0_i32_0, %c0_i32_1 : i32, i32, i32
  }
  func.func @transform_4(%arg0: i32) -> (i32, i32, i32) {
    %c0_i32 = arith.constant 0 : i32
    %c0_i32_0 = arith.constant 0 : i32
    %c0_i32_1 = arith.constant 0 : i32
    %c0_i32_2 = arith.constant 0 : i32
    return %c0_i32, %c0_i32_0, %c0_i32_1 : i32, i32, i32
  }
  func.func @transform_5(%arg0: i32) -> (i32, i32, i32) {
    %c0_i32 = arith.constant 0 : i32
    %c0_i32_0 = arith.constant 0 : i32
    %c0_i32_1 = arith.constant 0 : i32
    %c0_i32_2 = arith.constant 0 : i32
    return %c0_i32, %c0_i32_0, %c0_i32_1 : i32, i32, i32
  }
  func.func @transform_6(%arg0: i32) -> (i32, i32) {
    %c0_i32 = arith.constant 0 : i32
    %c0_i32_0 = arith.constant 0 : i32
    %c0_i32_1 = arith.constant 0 : i32
    return %c0_i32, %c0_i32_0 : i32, i32
  }
  func.func @transform_7(%arg0: i32) -> (i32, i32) {
    %c0_i32 = arith.constant 0 : i32
    %c0_i32_0 = arith.constant 0 : i32
    %c0_i32_1 = arith.constant 0 : i32
    return %c0_i32, %c0_i32_0 : i32, i32
  }
  func.func @transform_8(%arg0: i32) -> (i32, i32) {
    %c0_i32 = arith.constant 0 : i32
    %c0_i32_0 = arith.constant 0 : i32
    %c0_i32_1 = arith.constant 0 : i32
    return %c0_i32, %c0_i32_0 : i32, i32
  }
  func.func @transform_9(%arg0: i32) -> (i32, i32) {
    %c0_i32 = arith.constant 0 : i32
    %c0_i32_0 = arith.constant 0 : i32
    %c0_i32_1 = arith.constant 0 : i32
    return %c0_i32, %c0_i32_0 : i32, i32
  }
  func.func @transform_10(%arg0: i32) -> (i32, i32) {
    %c0_i32 = arith.constant 0 : i32
    %c0_i32_0 = arith.constant 0 : i32
    %c0_i32_1 = arith.constant 0 : i32
    return %c0_i32, %c0_i32_0 : i32, i32
  }
  func.func @transform_11(%arg0: i32) -> (i32, i32) {
    %c0_i32 = arith.constant 0 : i32
    %c0_i32_0 = arith.constant 0 : i32
    %c0_i32_1 = arith.constant 0 : i32
    return %c0_i32, %c0_i32_0 : i32, i32
  }
  func.func @transform_12(%arg0: i32) -> (i32, i32, i32) {
    %c0_i32 = arith.constant 0 : i32
    %c0_i32_0 = arith.constant 0 : i32
    %c0_i32_1 = arith.constant 0 : i32
    return %arg0, %c0_i32, %c0_i32_0 : i32, i32, i32
  }
}

</mosaic_0001>

<bundles_post_ra>
// kernel: tpu_custom_call.1
= control target key start
LH: loop header
LB: loop body
LE: loop exit
PB: predicated region body
PF: predicated region fallthrough
CT: control target
= control target key end

     0   :  { %17 = vsyncpa [#allocation5], 0  ;;  %s1780_s0 = inlined_call_operand.vmem [shape: bf16[2,16,128], index: 0, kind: input, shape index: {}]   ;;  %s1781_s1 = inlined_call_operand.vmem [shape: bf16[32,16], index: 1, kind: input, shape index: {}]   ;;  %s1782_s2 = inlined_call_operand.vmem [shape: f32[32,1], index: 2, kind: input, shape index: {}]   ;;  %s1783_s3 = inlined_call_operand.vmem [shape: bf16[3,8,24], index: 3, kind: input, shape index: {}]   ;;  %s1784_s4 = inlined_call_operand.vmem [shape: f32[3,8,1], index: 4, kind: input, shape index: {}]   ;;  %s1785_s5 = inlined_call_operand.vmem [shape: f32[3,8,1], index: 5, kind: input, shape index: {}]   ;;  %s1786_s6 = inlined_call_operand.vmem [shape: f32[8,32], index: 6, kind: input, shape index: {}]   ;;  %s1787_s7 = inlined_call_operand.vmem [shape: f32[8,1], index: 7, kind: input, shape index: {}]   ;;  %s1788_s8 = inlined_call_operand.vmem [shape: f32[32,8], index: 8, kind: input, shape index: {}]   ;;  %s1789_s9 = inlined_call_operand.vmem [shape: f32[32,1], index: 9, kind: input, shape index: {}]   ;;  %s1790_s10 = inlined_call_operand.vmem [shape: f32[32,1], index: 10, kind: input, shape index: {}]   ;;  %s1791_s11 = inlined_call_operand.vmem [shape: f32[32,1], index: 11, kind: input, shape index: {}]   ;;  %s1792_s12 = inlined_call_operand.hbm [shape: f32[2,32,128], index: 12, kind: output, shape index: {}]  }
   0x1   :  { %19 = vsyncpa [#allocation5 + $0x1], 0  ;;  %s1506_s21 = smov 0   ;;  %s1508_s22 = smov 0  }
   0x2   :  { %s1510_s23 = smov 0   ;;  %s1512_s24 = smov 0  }
   0x3 LB: > { %1794 = sst [smem:[#allocation7_spill]] %s1425_s23  ;;  %s1527_s25 = sadd.s32 4294967295, %s1429_s24   ;;  %s1429_s24 = sphi %s1512_s24, %s1804_s24   ;;  %s1425_s23 = sphi %s1510_s23, %s1801_s23   ;;  %s1421_s22 = sphi %s1508_s22, %s1803_s22   ;;  %s1417_s21 = sphi %s1506_s21, %s1802_s21  }
   0x4   : > { %s1165_s26 = sadd.s32 4294967294, %s1429_s24   ;;  %s1531_s27 = sadd.s32 1, %s1429_s24  }
   0x5   : > { %s289_s28 = sadd.s32 1, %s1425_s23  ;;  %s286_s29 = ssub.s32 %s1429_s24, %s1531_s27 }
   0x6   : > { %p299_p0 = scmp.ne.s32.totalorder %s1425_s23, %s1421_s22  ;;  %p287_p1 = scmp.eq.s32.totalorder %s286_s29, 0 }
   0x7   : > { %p300_p2 = scmp.eq.s32.totalorder %s1527_s25, 1  ;;  %p305_p3 = scmp.ne.s32.totalorder %s1421_s22, %s1417_s21 }
   0x8   : > { %p306_p4 = scmp.eq.s32.totalorder %s1165_s26, 1  ;;  %p1168_p7 = scmp.ge.s32.totalorder %s1429_s24, 1 }
   0x9   : > { %s1542_s30 = scalar_select %p287_p1, %s1425_s23, %s289_s28  }
   0xa   : > { %p1544_p5 = por %p300_p2, %p299_p0  ;;  %p1548_p6 = por %p306_p4, %p305_p3 }
   0xb   : > { %1795 = sst [smem:[#allocation8_spill]] %s1542_s30  ;;  %p365_p8 = scmp.lt.s32.totalorder %s1429_s24, 3 }
   0xd   : > { %p366_p9 = pnand %p1168_p7, %p365_p8 }
   0xe   : > { %p407_p10 = scmp.lt.s32.totalorder (!%p366_p9), %s1527_s25, 1  ;;  %v1349_v0 = vld [vmem:[%s1781_s1] sm:$0xff] (!%p366_p9)   ;;  %vm459_vm0 = vcmask (!%p366_p9), 130048   ;;  %v1431_v2 = vmov (!%p366_p9), 0   ;;  %v420_v3 = vld [vmem:[%s1782_s2 + $0x8] sm:$0xff] (!%p366_p9)  ;;  %v421_v6 = vld [vmem:[%s1782_s2 + $0x10] sm:$0xff] (!%p366_p9)  ;;  %v526_v24 = vlaneseq (!%p366_p9) }
   0xf   : > { %369 = sbr.rel (%p366_p9) target bundleno = 2064 (0x810), region = 68  ;;  %1245 = vmatprep.mubr.msk.bf16.mxu1 (!%p366_p9), %vm459_vm0, %v1349_v0  ;;  %v419_v1 = vld [vmem:[%s1782_s2] sm:$0xff] (!%p366_p9)  ;;  %1346 = vset.pattern.permute.xlu0 (!%p366_p9), %v1431_v2  ;;  %v1350_v5 = vld [vmem:[%s1781_s1 + $0x8] sm:$0xff] (!%p366_p9)   ;;  %v1432_v17 = vmov (!%p366_p9), 0.0   ;;  %vm1433_vm1 = vmmov (!%p366_p9), 0   ;;  %s1434_s23 = smov (!%p366_p9), 2  }
  0x10   : > { %1347 = vset.pattern.permute.xlu1 (!%p366_p9), %v1431_v2  ;;  %425 = vperm.xlu0 (!%p366_p9), %1346, %v419_v1   ;;  %v608_v7 = vld [vmem:[%s1784_s4] sm:$0xff] (!%p366_p9)  ;;  %s1435_s30 = smov (!%p366_p9), 126   ;;  %v422_v22 = vld [vmem:[%s1782_s2 + $0x18] sm:$0xff] (!%p366_p9)  ;;  %v1599_v25 = vand.u32 (!%p366_p9), 127, %v526_v24  ;;  %vm1436_vm5 = vmmov (!%p366_p9), 1   ;;  %vm564_vm8 = vcmask (!%p366_p9), 1043456  }
  0x11   : > { %1257 = vmatprep.subr.bf16.mxu0 (!%p366_p9), %v1432_v17  ;;  %1261 = vmatprep.mubr.msk.bf16.mxu0 (!%p366_p9), %vm1433_vm1, %v1432_v17  ;;  %v615_v23 = vld [vmem:[%s1785_s5] sm:$0xff] (!%p366_p9)  ;;  %vm560_vm9 = vcmask (!%p366_p9), 195584   ;;  %v1187_v54 = vld [vmem:[%s1785_s5 + $0x8] sm:$0xff] (!%p366_p9)  ;;  %vm798_vm11 = vcmask (!%p366_p9), 261120   ;;  %vm881_vm12 = vcmask (!%p366_p9), 64512   ;;  %s404_s28 = sand.u32 (!%p366_p9), 1, %s1421_s22  }
  0x12   : > { %v528_v26 = vadd.s32 (!%p366_p9), 4294967294, %v1599_v25  ;;  %v1603_v27 = vadd.s32 (!%p366_p9), 2, %v1599_v25  ;;  %v559_v35 = vld [vmem:[%s1783_s3] sm:$0xf] (!%p366_p9)  ;;  %v1186_v55 = vld [vmem:[%s1784_s4 + $0x8] sm:$0xff] (!%p366_p9)  ;;  %vm536_vm10 = vcmp.lt.s32.totalorder (!%p366_p9), %v1599_v25, 32 }
  0x13   : > { %v1181_v62 = vld [vmem:[%s1783_s3 + $0x4] sm:$0xf] (!%p366_p9)  ;;  %s1210_s18 = sshll.u32 (!%p366_p9), %s1527_s25, 9 }
  0x14   : > { %430 = vperm.xlu0 (!%p366_p9), %1346, %v420_v3   ;;  %vm529_vm2 = vcmp.ge.s32.totalorder (!%p366_p9), %v528_v26, 0  ;;  %vm530_vm3 = vcmp.lt.s32.totalorder (!%p366_p9), %v528_v26, 32  ;;  %vm534_vm7 = vcmp.lt.s32.totalorder (!%p366_p9), %v1603_v27, 32  ;;  %v873_v25 = vld [vmem:[%s1788_s8] sm:$0xff] (!%p366_p9) }
  0x15   : > { %vm531_vm4 = vmand (!%p366_p9), %vm529_vm2, %vm530_vm3 }
  0x16   : > { %s408_s17 = scalar_select %p407_p10, %s1527_s25, 1  ;;  %vm1605_vm6 = vmpackc.low %vm1436_vm5, %vm531_vm4 }
  0x18   : > { %s1209_s20 = sshll.u32 %s408_s17, 3  ;;  %435 = vperm.xlu0 %1346, %v421_v6   ;;  %s1739_s17 = scalar_lea.sflag [#allocation5], %s404_s28 }
  0x19   : > { %s411_s29 = scalar_lea.vmem %s1780_s0, %s1209_s20  ;;  %s1438_s20 = smov [#allocation4]  }
  0x1a   : > { %v1348_v4 = vld [vmem:[%s411_s29] sm:$0xff]   ;;  %s1169_s29 = sshll.u32 %s404_s28, 5  ;;  %s1371_s26 = sshll.u32 %s1438_s20, 4  ;;  %s1372_s26 = int_to_ptr.vmem [resolvable:$false] %s1371_s26 }
  0x1b   : > { %1243 = vmatprep.subr.bf16.mxu1 %v1348_v4  ;;  %s406_s15 = scalar_lea.vmem [#allocation4], %s1169_s29  ;;  %s1373_s29 = scalar_lea.vmem %s1372_s26, 1024 }
  0x1c   : > { %1244 = vmatpush3.bf16.msra.mxu1 %v1348_v4  ;;  %611 = vperm.xlu0 %1346, %v608_v7   ;;  %s1103_s16 = sshll.u32 %s406_s15, 4  ;;  %s1735_s16 = int_to_ptr.vmem [resolvable:$true] %s1103_s16 }
  0x1d   : > { %1249 = vmatprep.subr.bf16.mxu1 %v1432_v17  ;;  %s1367_s25 = scalar_lea.vmem %s1735_s16, 512  ;;  %p1374_p0 = scmp.lt.s32.totalorder %s1735_s16, %s1372_s26 }
  0x1e   : > { %p1368_p11 = scmp.ne.s32.totalorder %s1735_s16, %s1367_s25  ;;  %p1375_p1 = scmp.lt.s32.totalorder %s1373_s29, %s1367_s25 }
  0x1f   : > { %1246 = vmatmul.mubr.msk.bf16.vlgmr.msra.gmra.mrb[0].mxu1 %vm459_vm0, %v1350_v5 }
  0x20   : > { %1253 = vmatprep.mubr.msk.bf16.mxu1 %vm1433_vm1, %v1432_v17  ;;  %p1369_p12 = pnand %p1368_p11, %p1544_p5  ;;  %p1376_p2 = por %p1375_p1, %p1374_p0 }
  0x22   : > { %p1370_p13 = pneg %p1369_p12 }
  0x24   : > { %p1377_p3 = pnand %p1376_p2, %p1370_p13 }
  0x8f   : > { %v426_v8 = vpop.permute.xlu0 %425 }
  0x93   : > { %v431_v12 = vpop.permute.xlu0 %430 }
  0x97   : > { %v436_v36 = vpop.permute.xlu0 %435 }
  0x9b   : > { %v612_v41 = vpop.permute.xlu0 %611 }
  0xf2   : > { %v1247_v9 = vpop.f32.mrb[0].mxu1 }
  0xf3   : > { %v500_v10 = vpop.f32.mrb[1].mxu1  ;;  %v509_v38 = vadd.f32 %v1247_v9, %v436_v36 }
  0xf4   : > { %v1248_v11 = vpop.f32.mrb[2].mxu1  ;;  %v501_v14 = vadd.f32 %v500_v10, %v426_v8 }
  0xf5   : > { %v503_v13 = vpop.f32.mrb[3].mxu1 }
  0xf6   : > { %v504_v15 = vadd.f32 %v503_v13, %v431_v12  ;;  %v1193_v12 = vld [vmem:[%s1784_s4 + $0x10] sm:$0xff] }
  0xf8   : > { %v1214_v16 = vpack.c.bf16 %v504_v15, %v501_v14 }
  0xfa   : > { %1215 = vst [vmem:[#allocation2] sm:$0xff] %v1214_v16   ;;  %v1012_v16 = vld [vmem:[%s1791_s11 + $0x8] sm:$0xff] }
 0x101   : > { %v1581_v18 = vld [vmem:[#allocation2] sm:$0xff]  }
 0x102   : > { %v538_v19 = vunpack.c.l.bf16 %v1581_v18  ;;  %v545_v20 = vunpack.c.h.bf16 %v1581_v18  ;;  %v1013_v18 = vld [vmem:[%s1791_s11 + $0x10] sm:$0xff] }
 0x104   : > { %v546_v21 = vadd.f32 %v545_v20, %v538_v19  ;;  %v541_v13 = vsel %vm536_vm10, %v538_v19, 0.0  ;;  %v1437_v20 = vmov 0.0|0.0  }
 0x106   : > { %547 = vrot.lane.b32.xlu1 %v546_v21, %s1434_s23 }
 0x10a   : > { %552 = vrot.lane.b32.xlu1 %v546_v21, %s1435_s30 }
 0x10e   : > { %440 = vperm.xlu1 %1347, %v422_v22  }
 0x112   : > { %618 = vperm.xlu1 %1347, %v615_v23  }
 0x178   : > { %v548_v28 = vpop.permute.xlu1 %547 }
 0x179   : > { %v1178_v30 = vpack.c.bf16 %v546_v21, %v548_v28  ;;  %v1188_v28 = vld [vmem:[%s1783_s3 + $0x8] sm:$0xf] }
 0x17b   : > { %1250 = vmatpush3.bf16.msk.msra.mxu1 %vm1605_vm6, %v1178_v30 }
 0x17c   : > { %v553_v31 = vpop.permute.xlu1 %552  ;;  %1251 = vmatprep.subr.bf16.mxu1 %v1432_v17 }
 0x17d   : > { %v556_v32 = vsel %vm534_vm7, %v553_v31, 0.0 }
 0x17e   : > { %v558_v33 = vpack.c.bf16 %v556_v32, %v556_v32 }
 0x180   : > { %v566_v34 = vsel %vm564_vm8, %v558_v33, 0 }
 0x181   : > { %1252 = vmatpush3.bf16.msra.mxu1 %v566_v34 }
 0x182   : > { %1265 = vmatprep.subr.bf16.mxu1 %v1432_v17 }
 0x184   : > { %1254 = vmatmul.mubr.msk.bf16.vlgmr.msra.gmra.mrb[4].mxu1 %vm560_vm9, %v559_v35 }
 0x185   : > { %1269 = vmatprep.mubr.msk.bf16.mxu1 %vm1433_vm1, %v1432_v17 }
 0x18d   : > { %v441_v37 = vpop.permute.xlu1 %440 }
 0x18e   : > { %v512_v39 = vadd.f32 %v1248_v11, %v441_v37  ;;  %v1194_v11 = vld [vmem:[%s1785_s5 + $0x10] sm:$0xff] }
 0x190   : > { %v1219_v40 = vpack.c.bf16 %v512_v39, %v509_v38 }
 0x191   : > { %v619_v45 = vpop.permute.xlu1 %618 }
 0x192   : > { %1220 = vst [vmem:[#allocation2 + $0x8] sm:$0xff] %v1219_v40  }
 0x199   : > { %v628_v47 = vld [vmem:[#allocation2 + $0x8] sm:$0xff]  }
 0x19a   : > { %v629_v51 = vunpack.c.l.bf16 %v628_v47  ;;  %v711_v8 = vunpack.c.h.bf16 %v628_v47 }
 0x257   : > { %v602_v42 = vpop.f32.mrb[4].mxu1 }
 0x258   : > { %v614_v43 = vmul.f32 %v612_v41, %v602_v42  ;;  %v1255_v44 = vpop.f32.mrb[5].mxu1 }
 0x259   : > { %v605_v46 = vpop.f32.mrb[6].mxu1 }
 0x25a   : > { %v621_v48 = vadd.f32 %v619_v45, %v614_v43  ;;  %v1256_v49 = vpop.f32.mrb[7].mxu1  ;;  %v1011_v43 = vld [vmem:[%s1791_s11] sm:$0xff] }
 0x25b   : > { %v796_v49 = vld [vmem:[%s1786_s6] sm:$0xff] }
 0x25c   : > { %v622_v50 = vmax.f32 %v621_v48, 0.0 }
 0x25e   : > { %v623_v52 = vpack.c.bf16 %v622_v50, %v622_v50  ;;  %v630_v53 = vadd.f32 %v629_v51, %v622_v50  ;;  %v625_v15 = vsel %vm536_vm10, %v622_v50, 0.0  ;;  %v797_v50 = vld [vmem:[%s1787_s7] sm:$0xff] }
 0x260   : > { %624 = vst [vmem:[#allocation3] sm:$0xf] %v623_v52  ;;  %634 = vrot.lane.b32.xlu1 %v630_v53, %s1435_s30  ;;  %631 = vrot.lane.b32.xlu0 %v630_v53, %s1434_s23 }
 0x264   : > { %699 = vperm.xlu1 %1347, %v1187_v54   ;;  %691 = vperm.xlu0 %1346, %v1186_v55   ;;  %v874_v55 = vld [vmem:[%s1788_s8 + $0x8] sm:$0xff] }
 0x2d2   : > { %v635_v56 = vpop.permute.xlu1 %634  ;;  %v632_v57 = vpop.permute.xlu0 %631 }
 0x2d3   : > { %v636_v58 = vsel %vm534_vm7, %v635_v56, 0.0  ;;  %v1183_v59 = vpack.c.bf16 %v630_v53, %v632_v57  ;;  %v875_v56 = vld [vmem:[%s1788_s8 + $0x10] sm:$0xff]  ;;  %v876_v57 = vld [vmem:[%s1788_s8 + $0x18] sm:$0xff] }
 0x2d4   : > { %v638_v60 = vpack.c.bf16 %v636_v58, %v636_v58  ;;  %v878_v58 = vld [vmem:[%s1789_s9 + $0x8] sm:$0xff] }
 0x2d5   : > { %1258 = vmatpush3.bf16.msk.msra.mxu0 %vm1605_vm6, %v1183_v59  ;;  %v877_v59 = vld [vmem:[%s1789_s9] sm:$0xff] }
 0x2d6   : > { %1259 = vmatprep.subr.bf16.mxu0 %v1432_v17  ;;  %v645_v61 = vsel %vm564_vm8, %v638_v60, 0 }
 0x2d9   : > { %1260 = vmatpush3.bf16.msra.mxu0 %v645_v61 }
 0x2da   : > { %1292 = vmatprep.subr.bf16.mxu0 %v1437_v20 }
 0x2dc   : > { %1262 = vmatmul.mubr.msk.bf16.vlgmr.msra.gmra.mrb[0].mxu0 %vm560_vm9, %v1181_v62 }
 0x2dd   : > { %1281 = vmatprep.mubr.msk.f32.mxu0 %vm1433_vm1, %v1432_v17 }
 0x2e3   : > { %v692_v63 = vpop.permute.xlu0 %691  ;;  %v700_v3 = vpop.permute.xlu1 %699 }
 0x3af   : > { %v681_v0 = vpop.f32.mrb[0].mxu0 }
 0x3b0   : > { %v694_v1 = vmul.f32 %v692_v63, %v681_v0  ;;  %v1263_v2 = vpop.f32.mrb[1].mxu0  ;;  %v880_v0 = vld [vmem:[%s1789_s9 + $0x18] sm:$0xff] }
 0x3b1   : > { %v684_v4 = vpop.f32.mrb[2].mxu0  ;;  %v879_v2 = vld [vmem:[%s1789_s9 + $0x10] sm:$0xff] }
 0x3b2   : > { %v702_v5 = vadd.f32 %v700_v3, %v694_v1  ;;  %v1264_v6 = vpop.f32.mrb[3].mxu0 }
 0x3b4   : > { %v703_v7 = vmax.f32 %v702_v5, 0.0 }
 0x3b6   : > { %v704_v9 = vpack.c.bf16 %v703_v7, %v703_v7  ;;  %v712_v10 = vadd.f32 %v711_v8, %v703_v7  ;;  %v707_v14 = vsel %vm536_vm10, %v703_v7, 0.0 }
 0x3b8   : > { %706 = vst [vmem:[#allocation3 + $0x4] sm:$0xf] %v704_v9  ;;  %716 = vrot.lane.b32.xlu1 %v712_v10, %s1435_s30  ;;  %713 = vrot.lane.b32.xlu0 %v712_v10, %s1434_s23  ;;  %s1733_s30 = scalar_lea.hbm %s1792_s12, %s1210_s18 }
 0x3bc   : > { %781 = vperm.xlu1 %1347, %v1194_v11   ;;  %773 = vperm.xlu0 %1346, %v1193_v12  }
 0x3db   : > { %542 = vadd.xlane.f32.xlu0 %v541_v13 }
 0x3df   : > { %708 = vadd.xlane.f32.xlu0 %v707_v14 }
 0x3e0   : > { %626 = vadd.xlane.f32.xlu1 %v625_v15 }
 0x3f1   : > { %1041 = vperm.xlu1 %1347, %v1012_v16  }
 0x3f5   : > { %1059 = vperm.xlu1 %1347, %v1013_v18   ;;  %v1004_v18 = vld [vmem:[%s1790_s10 + $0x8] sm:$0xff] }
 0x42a   : > { %v717_v19 = vpop.permute.xlu1 %716  ;;  %v714_v21 = vpop.permute.xlu0 %713 }
 0x42b   : > { %v718_v22 = vsel %vm534_vm7, %v717_v19, 0.0  ;;  %v1190_v23 = vpack.c.bf16 %v712_v10, %v714_v21 }
 0x42c   : > { %v720_v24 = vpack.c.bf16 %v718_v22, %v718_v22 }
 0x42d   : > { %1266 = vmatpush3.bf16.msk.msra.mxu1 %vm1605_vm6, %v1190_v23  ;;  %v1003_v23 = vld [vmem:[%s1790_s10] sm:$0xff] }
 0x42e   : > { %1267 = vmatprep.subr.bf16.mxu1 %v1432_v17  ;;  %v727_v26 = vsel %vm564_vm8, %v720_v24, 0  ;;  %v1005_v24 = vld [vmem:[%s1790_s10 + $0x10] sm:$0xff] }
 0x431   : > { %1268 = vmatpush3.bf16.msra.mxu1 %v727_v26 }
 0x434   : > { %1270 = vmatmul.mubr.msk.bf16.vlgmr.msra.gmra.mrb[8].mxu1 %vm560_vm9, %v1188_v28 }
 0x43b   : > { %v774_v30 = vpop.permute.xlu0 %773  ;;  %v782_v31 = vpop.permute.xlu1 %781 }
 0x468   : > { %v543_v27 = vpop.xlane.xlu0 %542 }
 0x469   : > { %v792_v33 = vmul.f32 0.03125, %v543_v27  ;;  %v1006_v27 = vld [vmem:[%s1790_s10 + $0x18] sm:$0xff] }
 0x46c   : > { %v709_v44 = vpop.xlane.xlu0 %708 }
 0x46d   : > { %v627_v32 = vpop.xlane.xlu1 %626  ;;  %v794_v46 = vmul.f32 0.03125, %v709_v44 }
 0x46e   : > { %v793_v34 = vmul.f32 0.03125, %v627_v32  ;;  %v1014_v32 = vld [vmem:[%s1791_s11 + $0x18] sm:$0xff] }
 0x470   : > { %v1293_v35 = vpack.c.bf16 %v793_v34, %v792_v33 }
 0x471   : > { %v1042_v34 = vpop.permute.xlu1 %1041 }
 0x472   : > { %1294 = vmatpush3.bf16.msra.mxu0 %v1293_v35 }
 0x473   : > { %1295 = vmatprep.subr.bf16.mxu0 %v1437_v20 }
 0x475   : > { %v1060_v35 = vpop.permute.xlu1 %1059 }
 0x507   : > { %v763_v29 = vpop.f32.mrb[8].mxu1 }
 0x508   : > { %v776_v17 = vmul.f32 %v774_v30, %v763_v29  ;;  %v1271_v36 = vpop.f32.mrb[9].mxu1  ;;  %v1031_v29 = vld [vmem:[#allocation3] sm:$0xff]  }
 0x509   : > { %v766_v37 = vpop.f32.mrb[10].mxu1  ;;  %v1050_v44 = vunpack.c.h.bf16 %v1031_v29 }
 0x50a   : > { %v784_v38 = vadd.f32 %v782_v31, %v776_v17  ;;  %v1272_v39 = vpop.f32.mrb[11].mxu1  ;;  %v1032_v17 = vunpack.c.l.bf16 %v1031_v29  ;;  %v1015_v37 = vld [vmem:[#allocation2] ss:$12 sps:$4 sm:$0xff]  }
 0x50c   : > { %v785_v40 = vmax.f32 %v784_v38, 0.0 }
 0x50e   : > { %v786_v41 = vpack.c.bf16 %v785_v40, %v785_v40  ;;  %v789_v42 = vsel %vm536_vm10, %v785_v40, 0.0  ;;  %v1046_v40 = vld [vmem:[#allocation2 + $0x4] sm:$0xff]  }
 0x50f   : > { %790 = vadd.xlane.f32.xlu0 %v789_v42  ;;  %v1016_v42 = vunpack.c.l.bf16 %v1015_v37 }
 0x510   : > { %788 = vst [vmem:[#allocation3 + $0x8] sm:$0xf] %v786_v41 }
 0x525   : > { %1025 = vperm.xlu0 %1346, %v1011_v43  }
 0x59c   : > { %v791_v45 = vpop.xlane.xlu0 %790 }
 0x59d   : > { %v795_v47 = vmul.f32 0.03125, %v791_v45  ;;  %v1047_v45 = vunpack.c.l.bf16 %v1046_v40 }
 0x59f   : > { %v1296_v48 = vpack.c.bf16 %v795_v47, %v794_v46 }
 0x5a1   : > { %1297 = vmatpush3.bf16.msra.mxu0 %v1296_v48 }
 0x5a4   : > { %1282 = vmatmul.mubr.msk.f32.vlgmr.msra.gmra.mrb[4].mxu0 %vm798_vm11, %v796_v49  ;;  %v1026_v38 = vpop.permute.xlu0 %1025  ;;  %v1067_v49 = vld [vmem:[#allocation3 + $0x8] sm:$0xf] }
 0x5a5   : > { %1286 = vmatprep.mubr.msk.f32.mxu0 %vm881_vm12, %v873_v25 }
 0x677   : > { %v868_v51 = vpop.f32.mrb[4].mxu0 }
 0x678   : > { %v869_v52 = vadd.f32 %v868_v51, %v797_v50  ;;  %v1283_v53 = vpop.f32.mrb[5].mxu0 }
 0x679   : > { %v1068_v53 = vunpack.c.l.bf16 %v1067_v49 }
 0x67a   : > { %v872_v54 = vmax.f32 %v869_v52, 0.0 }
 0x67c   : > { %1284 = vmatprep.subr.mxu0 %v872_v54 }
 0x67d   : > { %1285 = vmatpush3.msra.mxu0 %v872_v54 }
 0x67e   : > { %1287 = vmatmul.mubr.msk.f32.vlgmr.msra.gmra.mrb[6].mxu0 %vm881_vm12, %v874_v55 }
 0x67f   : > { %1289 = vmatprep.mubr.msk.f32.mxu0 %vm881_vm12, %v875_v56  ;;  %v1065_v56 = vunpack.c.h.bf16 %v1046_v40 }
 0x682   : > { %1290 = vmatmul.mubr.msk.f32.gmra.mrb[8].mxu0 %vm881_vm12, %v876_v57 }
 0x751   : > { %v1288_v60 = vpop.f32.mrb[6].mxu0 }
 0x752   : > { %v966_v61 = vadd.f32 %v1288_v60, %v878_v58  ;;  %v960_v62 = vpop.f32.mrb[7].mxu0 }
 0x753   : > { %v961_v63 = vadd.f32 %v960_v62, %v877_v59 }
 0x754   : > { %v1201_v1 = vmul.f32 -1.442695, %v966_v61 }
 0x755   : > { %v1200_v3 = vmul.f32 -1.442695, %v961_v63  ;;  %v1291_v4 = vpop.f32.mrb[8].mxu0  ;;  %v1083_v63 = vunpack.c.h.bf16 %v1015_v37 }
 0x756   : > { %1351 = vpow2.f32 %v1201_v1  ;;  %v976_v5 = vadd.f32 %v1291_v4, %v880_v0  ;;  %v970_v6 = vpop.f32.mrb[9].mxu0 }
 0x757   : > { %1353 = vpow2.f32 %v1200_v3  ;;  %v971_v7 = vadd.f32 %v970_v6, %v879_v2 }
 0x758   : > { %v1203_v8 = vmul.f32 -1.442695, %v976_v5 }
 0x759   : > { %v1202_v9 = vmul.f32 -1.442695, %v971_v7 }
 0x75a   : > { %1355 = vpow2.f32 %v1203_v8 }
 0x75b   : > { %1357 = vpow2.f32 %v1202_v9 }
 0x760   : > { %v1352_v10 = vpop.eup %1351 }
 0x761   : > { %v1354_v11 = vpop.eup %1353  ;;  %v992_v12 = vadd.f32 1.0, %v1352_v10 }
 0x762   : > { %v991_v13 = vadd.f32 1.0, %v1354_v11 }
 0x763   : > { %1359 = vrcp.f32 %v992_v12 }
 0x764   : > { %v1356_v14 = vpop.eup %1355  ;;  %1361 = vrcp.f32 %v991_v13 }
 0x765   : > { %v1358_v15 = vpop.eup %1357  ;;  %v994_v16 = vadd.f32 1.0, %v1356_v14 }
 0x766   : > { %v993_v20 = vadd.f32 1.0, %v1358_v15 }
 0x768   : > { %1363 = vrcp.f32 %v993_v20 }
 0x769   : > { %1365 = vrcp.f32 %v994_v16 }
 0x76d   : > { %v1360_v19 = vpop.eup %1359 }
 0x76e   : > { %v1008_v21 = vmul.f32 %v1360_v19, %v1004_v18  ;;  %v1362_v22 = vpop.eup %1361 }
 0x76f   : > { %v1007_v28 = vmul.f32 %v1362_v22, %v1003_v23 }
 0x770   : > { %1035 = vperm.xlu1 %1347, %v1008_v21  }
 0x772   : > { %v1364_v26 = vpop.eup %1363 }
 0x773   : > { %v1009_v30 = vmul.f32 %v1364_v26, %v1005_v24  ;;  %v1366_v31 = vpop.eup %1365 }
 0x774   : > { %1019 = vperm.xlu1 %1347, %v1007_v28   ;;  %v1010_v33 = vmul.f32 %v1366_v31, %v1006_v27 }
 0x775   : > { %1053 = vperm.xlu0 %1346, %v1009_v30  }
 0x778   : > { %1077 = vperm.xlu1 %1347, %v1014_v32  }
 0x779   : > { %1071 = vperm.xlu0 %1346, %v1010_v33  }
 0x7ef   : > { %v1036_v36 = vpop.permute.xlu1 %1035 }
 0x7f0   : > { %v1038_v39 = vmul.f32 %v1036_v36, %v1032_v17 }
 0x7f2   : > { %v1044_v41 = vadd.f32 %v1042_v34, %v1038_v39 }
 0x7f3   : > { %v1020_v43 = vpop.permute.xlu1 %1019 }
 0x7f4   : > { %v1045_v46 = vmax.f32 %v1044_v41, 0.0  ;;  %v1022_v47 = vmul.f32 %v1020_v43, %v1016_v42  ;;  %v1054_v48 = vpop.permute.xlu0 %1053 }
 0x7f5   : > { %v1056_v25 = vmul.f32 %v1054_v48, %v1050_v44 }
 0x7f6   : > { %v1048_v50 = vadd.f32 %v1047_v45, %v1045_v46  ;;  %v1028_v51 = vadd.f32 %v1026_v38, %v1022_v47 }
 0x7f7   : > { %v1062_v52 = vadd.f32 %v1060_v35, %v1056_v25  ;;  %v1078_v60 = vpop.permute.xlu1 %1077 }
 0x7f8   : > { %1086 = vst [vmem:[%s406_s15 + $0x8] sm:$0xff] %v1048_v50  ;;  %v1029_v54 = vmax.f32 %v1028_v51, 0.0  ;;  %v1072_v55 = vpop.permute.xlu0 %1071 }
 0x7f9   : > { %v1063_v57 = vmax.f32 %v1062_v52, 0.0  ;;  %v1074_v58 = vmul.f32 %v1072_v55, %v1068_v53 }
 0x7fa   : > { %v1030_v59 = vadd.f32 %v1029_v54, %v1016_v42 }
 0x7fb   : > { %v1066_v61 = vadd.f32 %v1065_v56, %v1063_v57  ;;  %v1080_v62 = vadd.f32 %v1078_v60, %v1074_v58 }
 0x7fc   : > { %1085 = vst [vmem:[%s406_s15] sm:$0xff] %v1030_v59 }
 0x7fd   : > { %1087 = vst [vmem:[%s406_s15 + $0x10] sm:$0xff] %v1066_v61  ;;  %v1081_v0 = vmax.f32 %v1080_v62, 0.0 }
 0x7ff   : > { %v1084_v1 = vadd.f32 %v1083_v63, %v1081_v0 }
 0x801   : > { %1088 = vst [vmem:[%s406_s15 + $0x18] sm:$0xff] %v1084_v1 }
 0x802   : > { %1380 = shalt.err (!%p1377_p3)
}
 0x803   : > { %s1381_s28 = scalar_lea.hbm %s1733_s30, 512  ;;  %s1385_s19 = scalar_lea.hbm %s1792_s12, 1024 }
 0x804   : > { %p1382_p4 = scmp.ne.s32.totalorder %s1733_s30, %s1381_s28  ;;  %p1386_p9 = scmp.lt.u32.totalorder %s1733_s30, %s1792_s12 }
 0x805   : > { %p1387_p10 = scmp.lt.u32.totalorder %s1385_s19, %s1381_s28  ;;  %p1389_p12 = scmp.lt.u32.totalorder %s1381_s28, %s1733_s30 }
 0x806   : > { %p1383_p7 = pnand %p1382_p4, %p1544_p5 }
 0x807   : > { %p1388_p11 = por %p1387_p10, %p1386_p9 }
 0x808   : > { %p1384_p8 = pneg %p1383_p7 }
 0x809   : > { %p1390_p13 = por %p1389_p12, %p1388_p11 }
 0x80b   : > { %p1391_p0 = pnand %p1390_p13, %p1384_p8 }
 0x80d   : > { %1394 = shalt.err (!%p1391_p0)
}
 0x80e   : > { %s1439_s25 = smov 128   ;;  %s1440_s26 = smov 8  }
 0x80f   : > { %1298 = dma.vmem_to_hbm [thread:$0]  (%p1544_p5), %s1735_s16, 512, %s1733_s30, %s1739_s17, %s1439_s25, %s1439_s25, %s1440_s26  }
 0x810 PF: > { %p1304_p1 = scmp.ge.s32.totalorder %s1429_s24, 2  ;;  %s1118_s29 = sand.u32 1, %s1417_s21  }
 0x811   : > { %s1119_s28 = scalar_lea.sflag [#allocation5], %s1118_s29 }
 0x812   : > { %p1301_p2 = pnand %p1304_p1, %p1548_p6 }
 0x814   : > { %1412 = dma.done.wait (!%p1301_p2), %s1119_s28, 512  }
 0x815   : > { %1414 = vsyncadd (!%p1301_p2), %s1119_s28, 4294966784  ;;  %s1800_s15 = sld [smem:[#allocation7_spill]]  ;;  %s1801_s23 = sld [smem:[#allocation8_spill]] }
 0x816   : > { %p22_p3 = scmp.ge.s32.totalorder %s1531_s27, 4   ;;  %s1802_s21 = smov %s1421_s22 }
 0x817   : > { %s1804_s24 = smov %s1531_s27 }
 0x818   :  { %24 = sbr.rel (!%p22_p3) target bundleno = 3 (0x3), region = 114 }
 0x81b   : > { %s1803_s22 = smov %s1800_s15 }
 0x81f   :  { %1124 = vsyncpa [#allocation5], 1 }
 0x820   :  { %1126 = vsyncpa [#allocation5 + $0x1], 1 }

</bundles_post_ra>
